<compile_context>
chip_gen: v6e
topology: v6e:2x2x1
jax: 0.10.0
libtpu: 0.0.40
codegen_flags: <defaults>
</compile_context>

<pallas_src>
import functools

import jax
import jax.numpy as jnp
from jax import lax
from jax.experimental import pallas as pl
from jax.experimental.pallas import tpu as pltpu

_EPS = 1e-8


def _round_up(x, m):
    return (x + m - 1) // m * m


def _tpu_vmem_capacity():
    try:
        info = pltpu.get_tpu_info()
        cap = getattr(info, "vmem_capacity_bytes", None)
        if cap:
            return int(cap)
    except Exception:
        pass
    return 64 << 20  # conservative fallback (v7x-sized)


_VMEM_CAP = _tpu_vmem_capacity()
# Leave compiler / internal-scratch headroom: ~85% of physical VMEM.
_VMEM_LIMIT = int(_VMEM_CAP * 0.85)
# Fused (single HBM read) path: block + double buffering of in+out must fit.
_FUSED_BLOCK_LIMIT = _VMEM_CAP // 5          # ≈25.6 MiB v5e/v6e, ≈12.8 MiB v7x
# Two-phase path target block bytes (multi-MiB tiles amortize grid-step cost).
_TWO_PHASE_TARGET_BLOCK = _VMEM_CAP // 24    # ≈5.3 MiB v5e/v6e, ≈2.6 MiB v7x


def _vmem_limit_bytes(*block_bytes):
    need = 2 * sum(block_bytes) + (2 << 20)  # double-buffered blocks + headroom
    return int(min(max(need, 8 << 20), _VMEM_LIMIT))


# --------------------------------------------------------------------------
# Fused single-pass kernel (whole sequence resident per batch item).
# --------------------------------------------------------------------------
def _norm_act_fused_kernel(x_ref, g_ref, be_ref, a_ref, o_ref, *, inv_count):
    # x_ref: (1, C, L)  g_ref/be_ref: (C, 1)  a_ref: (1, 1)  o_ref: (1, C, L)
    x = x_ref[0]                                            # (C, L) f32
    s = jnp.sum(x, axis=(0, 1), keepdims=True)              # (1, 1)
    ss = jnp.sum(x * x, axis=(0, 1), keepdims=True)         # (1, 1)
    mean = s * inv_count
    var = jnp.maximum(ss * inv_count - mean * mean, 0.0)    # clamp: no NaN
    inv_std = lax.rsqrt(var + _EPS)                         # EUP
    scale = g_ref[...] * inv_std                            # (C, 1)
    shift = be_ref[...] - scale * mean                      # (C, 1)
    y = scale * x + shift                                   # one FMA / element
    o_ref[0] = jnp.where(y >= 0.0, y, a_ref[...] * y)       # PReLU


# --------------------------------------------------------------------------
# Two-phase L-tiled path.
# Phase 1: per-(batch, split) partial sum / sumsq over L tiles.
# --------------------------------------------------------------------------
def _globln_stats_kernel(x_ref, sum_ref, sq_ref, *, l_tile, per_split, length,
                         need_mask):
    # x_ref: (1, C, TL)   sum_ref / sq_ref: (1, 1, 1, 1) resident accumulators
    @pl.when(pl.program_id(2) == 0)
    def _():
        sum_ref[...] = jnp.zeros_like(sum_ref)
        sq_ref[...] = jnp.zeros_like(sq_ref)

    x = x_ref[0]                                            # (C, TL)
    if need_mask:
        # Logical tile index (before index_map clamping) decides which columns
        # are real; garbage in partial / duplicated tiles contributes zero.
        tile = pl.program_id(1) * per_split + pl.program_id(2)
        col0 = tile * l_tile
        lane = lax.broadcasted_iota(jnp.int32, x.shape, 1)
        x = jnp.where(col0 + lane < length, x, 0.0)

    s = jnp.sum(x, axis=(0, 1), keepdims=True)              # (1, 1)
    ss = jnp.sum(x * x, axis=(0, 1), keepdims=True)         # (1, 1)
    sum_ref[...] += s.reshape(1, 1, 1, 1)
    sq_ref[...] += ss.reshape(1, 1, 1, 1)


# Phase 2: y = scale * x + shift, then PReLU.  scale/shift precomputed per
# batch outside the kernel (tiny (n, C, 1) XLA op) -> pure streaming FMA+select.
def _globln_prelu_apply_kernel(x_ref, sc_ref, sh_ref, a_ref, o_ref):
    # x_ref: (1, C, TL)  sc_ref/sh_ref: (1, C, 1)  a_ref: (1, 1)
    y = sc_ref[0] * x_ref[0] + sh_ref[0]                    # (C, TL)
    o_ref[0] = jnp.where(y >= 0.0, y, a_ref[...] * y)


# --------------------------------------------------------------------------
# Wrapper
# --------------------------------------------------------------------------
def norm_act(x, gamma, beta, alpha, *, l_tile=None, force_two_pass=False):
    """NormAct forward: GlobLN over (C, L) per batch item, then PReLU.

    x: (N, C, L) f32; gamma, beta: (C,); alpha: scalar (PReLU weight).
    """
    n, c, L = x.shape
    x = x.astype(jnp.float32)
    alpha2 = jnp.asarray(alpha, jnp.float32).reshape(1, 1)
    inv_count = 1.0 / float(c * L)

    blk_full = 4 * c * L
    use_fused = (not force_two_pass) and (blk_full <= _FUSED_BLOCK_LIMIT)

    if use_fused:
        gamma2 = gamma.reshape(c, 1).astype(jnp.float32)
        beta2 = beta.reshape(c, 1).astype(jnp.float32)
        kern = functools.partial(_norm_act_fused_kernel, inv_count=inv_count)
        return pl.pallas_call(
            kern,
            out_shape=jax.ShapeDtypeStruct((n, c, L), jnp.float32),
            grid=(n,),
            in_specs=[
                pl.BlockSpec((1, c, L), lambda b: (b, 0, 0)),
                pl.BlockSpec((c, 1), lambda b: (0, 0)),
                pl.BlockSpec((c, 1), lambda b: (0, 0)),
                pl.BlockSpec((1, 1), lambda b: (0, 0)),
            ],
            out_specs=pl.BlockSpec((1, c, L), lambda b: (b, 0, 0)),
            input_output_aliases={0: 0},
            compiler_params=pltpu.CompilerParams(
                dimension_semantics=("parallel",),
                vmem_limit_bytes=_vmem_limit_bytes(blk_full, blk_full)),
        )(x, gamma2, beta2, alpha2)

    # ---- two-phase, L-tiled (no padding, tail handled via partial blocks) ----
    if l_tile is None:
        l_tile = max(128, _TWO_PHASE_TARGET_BLOCK // (4 * c))
    l_tile = max(128, _round_up(int(l_tile), 128))
    l_tile = min(l_tile, _round_up(L, 128))
    n_lt = pl.cdiv(L, l_tile)
    blk = 4 * c * l_tile

    # Split the L reduction 2-way so both v7x TensorCores get phase-1 work even
    # at batch == 1 (harmless elsewhere).
    n_split = 2 if n_lt >= 2 else 1
    per = pl.cdiv(n_lt, n_split)
    need_mask = (L % l_tile != 0) or (n_lt % n_split != 0)

    last_blk = n_lt - 1
    x_stats_map = lambda b, s, l, per=per, last=last_blk: (
        b, 0, jnp.minimum(s * per + l, last))

    stats_kern = functools.partial(
        _globln_stats_kernel, l_tile=l_tile, per_split=per, length=L,
        need_mask=need_mask)
    sums, sqs = pl.pallas_call(
        stats_kern,
        out_shape=(jax.ShapeDtypeStruct((n, n_split, 1, 1), jnp.float32),
                   jax.ShapeDtypeStruct((n, n_split, 1, 1), jnp.float32)),
        grid=(n, n_split, per),
        in_specs=[pl.BlockSpec((1, c, l_tile), x_stats_map)],
        out_specs=(pl.BlockSpec((1, 1, 1, 1), lambda b, s, l: (b, s, 0, 0)),
                   pl.BlockSpec((1, 1, 1, 1), lambda b, s, l: (b, s, 0, 0))),
        compiler_params=pltpu.CompilerParams(
            dimension_semantics=("parallel", "parallel", "arbitrary"),
            vmem_limit_bytes=_vmem_limit_bytes(blk)),
    )(x)

    # Tiny per-batch scalar/channel math done in XLA (negligible vs HBM stream).
    total = jnp.sum(sums, axis=1)                            # (n, 1, 1)
    total_sq = jnp.sum(sqs, axis=1)                          # (n, 1, 1)
    mean = total * inv_count
    var = jnp.maximum(total_sq * inv_count - mean * mean, 0.0)
    inv_std = lax.rsqrt(var + _EPS)
    g = gamma.astype(jnp.float32)[None, :, None]             # (1, C, 1)
    b_ = beta.astype(jnp.float32)[None, :, None]
    scale = g * inv_std                                      # (n, C, 1)
    shift = b_ - scale * mean                                # (n, C, 1)

    out = pl.pallas_call(
        _globln_prelu_apply_kernel,
        out_shape=jax.ShapeDtypeStruct((n, c, L), jnp.float32),
        grid=(n, n_lt),
        in_specs=[
            pl.BlockSpec((1, c, l_tile), lambda b, l: (b, 0, l)),
            pl.BlockSpec((1, c, 1), lambda b, l: (b, 0, 0)),
            pl.BlockSpec((1, c, 1), lambda b, l: (b, 0, 0)),
            pl.BlockSpec((1, 1), lambda b, l: (0, 0)),
        ],
        out_specs=pl.BlockSpec((1, c, l_tile), lambda b, l: (b, 0, l)),
        input_output_aliases={0: 0},
        compiler_params=pltpu.CompilerParams(
            dimension_semantics=("parallel", "parallel"),
            vmem_limit_bytes=_vmem_limit_bytes(blk, blk)),
    )(x, scale, shift, alpha2)
    return out


# --------------------------------------------------------------------------
# Pure-JAX reference (mirrors GlobLN + PReLU forward exactly).
# --------------------------------------------------------------------------
def _reference(x, gamma, beta, alpha):
    mean = x.mean(axis=(1, 2), keepdims=True)
    var = ((x - mean) ** 2).mean(axis=(1, 2), keepdims=True)
    normed = (x - mean) / jnp.sqrt(var + _EPS)
    y = gamma[None, :, None] * normed + beta[None, :, None]
    return jnp.where(y >= 0.0, y, alpha * y)


if __name__ == "__main__":
    key = jax.random.PRNGKey(0)
    k1, k2, k3, k4, k5 = jax.random.split(key, 5)

    # NormAct(nOut=4) applied to a (batch, channels, length) tensor.
    N, C, L = 2, 4, 16
    x = jax.random.normal(k1, (N, C, L), dtype=jnp.float32)
    gamma = 1.0 + 0.1 * jax.random.normal(k2, (C,), dtype=jnp.float32)
    beta = 0.1 * jax.random.normal(k3, (C,), dtype=jnp.float32)
    alpha = jnp.float32(0.25)                 # nn.PReLU() default single weight

    # Path 1: fused single-pass kernel (small / mid sequences).
    ref = _reference(x, gamma, beta, alpha)
    out = jax.block_until_ready(norm_act(x, gamma, beta, alpha))
    assert out.shape == ref.shape, (out.shape, ref.shape)
    assert jnp.allclose(out, ref, atol=2e-5, rtol=2e-5), float(
        jnp.max(jnp.abs(out - ref)))

    # Path 2: two-phase L-tiled kernel, ragged L (tail-tile mask + clamped
    # index_map + 2-way stats split).
    L2 = 300
    x2 = jax.random.normal(k4, (N, C, L2), dtype=jnp.float32)
    ref2 = _reference(x2, gamma, beta, alpha)
    out2 = jax.block_until_ready(
        norm_act(x2, gamma, beta, alpha, force_two_pass=True, l_tile=128))
    assert out2.shape == ref2.shape, (out2.shape, ref2.shape)
    assert jnp.allclose(out2, ref2, atol=2e-5, rtol=2e-5), float(
        jnp.max(jnp.abs(out2 - ref2)))

    # Path 3: two-phase, 128-aligned L (unmasked fast path), batch == 1.
    L3 = 256
    x3 = jax.random.normal(k5, (1, C, L3), dtype=jnp.float32)
    ref3 = _reference(x3, gamma, beta, alpha)
    out3 = jax.block_until_ready(
        norm_act(x3, gamma, beta, alpha, force_two_pass=True, l_tile=128))
    assert out3.shape == ref3.shape, (out3.shape, ref3.shape)
    assert jnp.allclose(out3, ref3, atol=2e-5, rtol=2e-5), float(
        jnp.max(jnp.abs(out3 - ref3)))

    print("KERNEL_OK")
</pallas_src>

<mosaic_0001>
module attributes {stable_mosaic.version = 11 : i64} {
  func.func @_norm_act_fused_kernel(%arg0: i32, %arg1: memref<1x4x16xf32, #tpu.memory_space<vmem>>, %arg2: memref<4x1xf32, #tpu.memory_space<vmem>>, %arg3: memref<4x1xf32, #tpu.memory_space<vmem>>, %arg4: memref<1x1xf32, #tpu.memory_space<vmem>>, %arg5: memref<1x4x16xf32, #tpu.memory_space<vmem>>) attributes {dimension_semantics = [#tpu.dimension_semantics<parallel>], iteration_bounds = array<i64: 2>, scalar_prefetch = 0 : i64, scratch_operands = 0 : i64, tpu.core_type = #tpu.core_type<tc>, window_params = [{transform_indices = @transform_0, window_bounds = array<i64: 1, 4, 16>}, {pipeline_mode = #tpu.pipeline_mode<synchronous>, transform_indices = @transform_1, window_bounds = array<i64: 4, 1>}, {pipeline_mode = #tpu.pipeline_mode<synchronous>, transform_indices = @transform_2, window_bounds = array<i64: 4, 1>}, {pipeline_mode = #tpu.pipeline_mode<synchronous>, transform_indices = @transform_3, window_bounds = array<i64: 1, 1>}, {transform_indices = @transform_4, window_bounds = array<i64: 1, 4, 16>}]} {
    %c0 = arith.constant 0 : index
    %c0_0 = arith.constant 0 : index
    %c0_1 = arith.constant 0 : index
    %0 = vector.load %arg1[%c0, %c0_0, %c0_1] : memref<1x4x16xf32, #tpu.memory_space<vmem>>, vector<1x4x16xf32>
    %1 = vector.shape_cast %0 : vector<1x4x16xf32> to vector<4x16xf32>
    %2 = vector.shape_cast %1 : vector<4x16xf32> to vector<1x4x16xf32>
    %cst = arith.constant dense<0.000000e+00> : vector<1xf32>
    %3 = vector.multi_reduction <add>, %2, %cst [1, 2] : vector<1x4x16xf32> to vector<1xf32>
    %4 = vector.shape_cast %3 : vector<1xf32> to vector<1x1x1xf32>
    %5 = vector.extract %4[0, 0, 0] : f32 from vector<1x1x1xf32>
    %6 = vector.broadcast %5 : f32 to vector<1x1xf32>
    %7 = arith.mulf %1, %1 : vector<4x16xf32>
    %8 = vector.shape_cast %7 : vector<4x16xf32> to vector<1x4x16xf32>
    %cst_2 = arith.constant dense<0.000000e+00> : vector<1xf32>
    %9 = vector.multi_reduction <add>, %8, %cst_2 [1, 2] : vector<1x4x16xf32> to vector<1xf32>
    %10 = vector.shape_cast %9 : vector<1xf32> to vector<1x1x1xf32>
    %11 = vector.extract %10[0, 0, 0] : f32 from vector<1x1x1xf32>
    %12 = vector.broadcast %11 : f32 to vector<1x1xf32>
    %cst_3 = arith.constant 1.562500e-02 : f32
    %13 = vector.broadcast %cst_3 : f32 to vector<1x1xf32>
    %14 = arith.mulf %6, %13 : vector<1x1xf32>
    %cst_4 = arith.constant 1.562500e-02 : f32
    %15 = vector.broadcast %cst_4 : f32 to vector<1x1xf32>
    %16 = arith.mulf %12, %15 : vector<1x1xf32>
    %17 = arith.mulf %14, %14 : vector<1x1xf32>
    %18 = arith.subf %16, %17 : vector<1x1xf32>
    %cst_5 = arith.constant 0.000000e+00 : f32
    %19 = vector.broadcast %cst_5 : f32 to vector<1x1xf32>
    %20 = arith.maximumf %18, %19 : vector<1x1xf32>
    %cst_6 = arith.constant 9.99999993E-9 : f32
    %21 = vector.broadcast %cst_6 : f32 to vector<1x1xf32>
    %22 = arith.addf %20, %21 : vector<1x1xf32>
    %23 = math.rsqrt %22 : vector<1x1xf32>
    %c0_7 = arith.constant 0 : index
    %c0_8 = arith.constant 0 : index
    %24 = vector.load %arg2[%c0_7, %c0_8] : memref<4x1xf32, #tpu.memory_space<vmem>>, vector<4x1xf32>
    %25 = vector.broadcast %23 : vector<1x1xf32> to vector<4x1xf32>
    %26 = arith.mulf %24, %25 : vector<4x1xf32>
    %c0_9 = arith.constant 0 : index
    %c0_10 = arith.constant 0 : index
    %27 = vector.load %arg3[%c0_9, %c0_10] : memref<4x1xf32, #tpu.memory_space<vmem>>, vector<4x1xf32>
    %28 = vector.broadcast %14 : vector<1x1xf32> to vector<4x1xf32>
    %29 = arith.mulf %26, %28 : vector<4x1xf32>
    %30 = arith.subf %27, %29 : vector<4x1xf32>
    %31 = vector.broadcast %26 : vector<4x1xf32> to vector<4x16xf32>
    %32 = arith.mulf %31, %1 : vector<4x16xf32>
    %33 = vector.broadcast %30 : vector<4x1xf32> to vector<4x16xf32>
    %34 = arith.addf %32, %33 : vector<4x16xf32>
    %cst_11 = arith.constant 0.000000e+00 : f32
    %35 = vector.broadcast %cst_11 : f32 to vector<4x16xf32>
    %36 = arith.cmpf oge, %34, %35 : vector<4x16xf32>
    %c0_12 = arith.constant 0 : index
    %c0_13 = arith.constant 0 : index
    %37 = vector.load %arg4[%c0_12, %c0_13] : memref<1x1xf32, #tpu.memory_space<vmem>>, vector<1x1xf32>
    %38 = vector.broadcast %37 : vector<1x1xf32> to vector<4x16xf32>
    %39 = arith.mulf %38, %34 : vector<4x16xf32>
    %40 = arith.select %36, %34, %39 : vector<4x16xi1>, vector<4x16xf32>
    %c0_14 = arith.constant 0 : index
    %c0_15 = arith.constant 0 : index
    %c0_16 = arith.constant 0 : index
    %41 = vector.load %arg5[%c0_14, %c0_15, %c0_16] : memref<1x4x16xf32, #tpu.memory_space<vmem>>, vector<1x4x16xf32>
    %42 = vector.shape_cast %41 : vector<1x4x16xf32> to vector<4x16xf32>
    %43 = vector.shape_cast %40 : vector<4x16xf32> to vector<1x4x16xf32>
    tpu.vector_store %arg5[%c0_14, %c0_15, %c0_16], %43 {strides = array<i32>} : memref<1x4x16xf32, #tpu.memory_space<vmem>>, vector<1x4x16xf32>,
    return
  }
  func.func @transform_0(%arg0: i32) -> (i32, i32, i32) {
    %c0_i32 = arith.constant 0 : i32
    %c0_i32_0 = arith.constant 0 : i32
    %c0_i32_1 = arith.constant 0 : i32
    return %arg0, %c0_i32, %c0_i32_0 : i32, i32, i32
  }
  func.func @transform_1(%arg0: i32) -> (i32, i32) {
    %c0_i32 = arith.constant 0 : i32
    %c0_i32_0 = arith.constant 0 : i32
    %c0_i32_1 = arith.constant 0 : i32
    return %c0_i32, %c0_i32_0 : i32, i32
  }
  func.func @transform_2(%arg0: i32) -> (i32, i32) {
    %c0_i32 = arith.constant 0 : i32
    %c0_i32_0 = arith.constant 0 : i32
    %c0_i32_1 = arith.constant 0 : i32
    return %c0_i32, %c0_i32_0 : i32, i32
  }
  func.func @transform_3(%arg0: i32) -> (i32, i32) {
    %c0_i32 = arith.constant 0 : i32
    %c0_i32_0 = arith.constant 0 : i32
    %c0_i32_1 = arith.constant 0 : i32
    return %c0_i32, %c0_i32_0 : i32, i32
  }
  func.func @transform_4(%arg0: i32) -> (i32, i32, i32) {
    %c0_i32 = arith.constant 0 : i32
    %c0_i32_0 = arith.constant 0 : i32
    %c0_i32_1 = arith.constant 0 : i32
    return %arg0, %c0_i32, %c0_i32_0 : i32, i32, i32
  }
}

</mosaic_0001>

<bundles_post_ra>
// kernel: tpu_custom_call.1
= control target key start
LH: loop header
LB: loop body
LE: loop exit
PB: predicated region body
PF: predicated region fallthrough
CT: control target
= control target key end

     0   :  { %s715_s0 = inlined_call_operand.hbm [shape: f32[2,4,16], index: 0, kind: input, shape index: {}, may-alias: {0,4}]   ;;  %s716_s1 = inlined_call_operand.vmem [shape: f32[4,1], index: 1, kind: input, shape index: {}]   ;;  %s717_s2 = inlined_call_operand.vmem [shape: f32[4,1], index: 2, kind: input, shape index: {}]   ;;  %s718_s3 = inlined_call_operand.<no memory space> [shape: f32[1,1], index: 3, kind: input, shape index: {}]   ;;  %s719_s4 = inlined_call_operand.hbm [shape: f32[2,4,16], index: 4, kind: output, shape index: {}, may-alias: {0,4}]  }
   0x1   :  { %v9_v0 = vstv %s718_s3 }
   0x2   :  { %10 = vst [vmem:[#allocation2] sm:$0x1] %v9_v0 }
   0x3   :  { %11 = vsyncpa [#allocation4], 0 }
   0x4   :  { %13 = vsyncpa [#allocation4 + $0x1], 0 }
   0x5   :  { %14 = vsyncpa [#allocation5], 0 }
   0x6   :  { %16 = vsyncpa [#allocation5 + $0x1], 0  ;;  %s555_s17 = smov 0   ;;  %s557_s18 = smov 0  }
   0x7   :  { %s559_s19 = smov 0   ;;  %s561_s20 = smov 0  }
   0x8 LB: > { %s576_s3 = sadd.s32 4294967295, %s522_s20   ;;  %s362_s21 = sadd.s32 4294967294, %s522_s20   ;;  %s522_s20 = sphi %s561_s20, %s736_s20   ;;  %s518_s19 = sphi %s559_s19, %s735_s19   ;;  %s514_s18 = sphi %s557_s18, %s734_s18   ;;  %s510_s17 = sphi %s555_s17, %s733_s17  }
   0x9   : > { %s580_s22 = sadd.s32 1, %s522_s20   ;;  %s29_s23 = sadd.s32 1, %s518_s19 }
   0xa   : > { %s26_s24 = ssub.s32 %s522_s20, %s580_s22  ;;  %p36_p0 = scmp.ne.s32.totalorder %s518_s19, %s514_s18 }
   0xb   : > { %p27_p1 = scmp.eq.s32.totalorder %s26_s24, 0  ;;  %p37_p2 = scmp.eq.s32.totalorder %s522_s20, 0 }
   0xc   : > { %p42_p3 = scmp.ne.s32.totalorder %s514_s18, %s510_s17  ;;  %p43_p4 = scmp.eq.s32.totalorder %s576_s3, 0 }
   0xd   : > { %s592_s25 = scalar_select %p27_p1, %s518_s19, %s29_s23  }
   0xe   : > { %p594_p5 = por %p37_p2, %p36_p0  ;;  %p598_p6 = por %p43_p4, %p42_p3 }
   0xf   : > { %p129_p7 = scmp.eq.s32.totalorder %s576_s3, 1  ;;  %p135_p8 = scmp.eq.s32.totalorder %s362_s21, 1 }
  0x10   : > { %s723_s27 = scalar_select %p598_p6, 1, 0 }
  0x11   : > { %p391_p10 = scmp.lt.s32.totalorder %s522_s20, 2  ;;  %p605_p11 = por %p129_p7, %p36_p0 }
  0x12   : > { %p609_p12 = por %p135_p8, %p42_p3  ;;  %s164_s30 = sand.u32 1, %s518_s19  }
  0x13   : > { %s724_s28 = scalar_select %p605_p11, 1, 0 }
  0x14   : > { %s725_s29 = scalar_select %p609_p12, 1, 0 }
  0x15   : > { %s366_s5 = sshll.u32 %s522_s20, 6  ;;  %s365_s6 = sshll.u32 %s164_s30, 2 }
  0x16   : > { %s618_s9 = scalar_lea.hbm %s715_s0, %s366_s5  ;;  %s168_s10 = scalar_lea.vmem [#allocation3], %s365_s6 }
  0x17   : > { %s175_s11 = sshll.u32 %s168_s10, 4  ;;  %p622_p13 = pnand %p391_p10, %p594_p5  ;;  %s626_s11 = int_to_ptr.vmem [resolvable:$true] %s175_s11 }
  0x18   : > { %s165_s13 = scalar_lea.sflag [#allocation4], %s164_s30  ;;  %s430_s14 = scalar_lea.hbm %s618_s9, 64 }
  0x19   : > { %p431_p2 = scmp.ne.s32.totalorder %s618_s9, %s430_s14  ;;  %p432_p3 = pneg %p622_p13 }
  0x1a   : > { %s435_s21 = scalar_lea.hbm %s715_s0, 128  ;;  %p436_p5 = scmp.lt.s32.totalorder %s618_s9, %s715_s0 }
  0x1b   : > { %p433_p4 = pnand %p432_p3, %p431_p2  ;;  %p437_p8 = scmp.lt.s32.totalorder %s435_s21, %s430_s14 }
  0x1d   : > { %p434_p7 = pneg %p433_p4  ;;  %p438_p10 = por %p437_p8, %p436_p5 }
  0x1f   : > { %p439_p9 = pnand %p438_p10, %p434_p7 }
  0x21   : > { %442 = shalt.err (!%p439_p9)
}
  0x22   : > { %s443_s26 = scalar_lea.vmem %s626_s11, 64  ;;  %s524_s30 = smov [#allocation3]  }
  0x23   : > { %p444_p0 = scmp.ne.s32.totalorder %s626_s11, %s443_s26  ;;  %s448_s5 = sshll.u32 %s524_s30, 4  ;;  %s449_s5 = int_to_ptr.vmem [resolvable:$false] %s448_s5 }
  0x24   : > { %s450_s6 = scalar_lea.vmem %s449_s5, 128  ;;  %p451_p4 = scmp.lt.s32.totalorder %s626_s11, %s449_s5 }
  0x25   : > { %p446_p1 = pnand %p444_p0, %p432_p3  ;;  %p452_p12 = scmp.lt.s32.totalorder %s450_s6, %s443_s26 }
  0x27   : > { %p447_p2 = pneg %p446_p1  ;;  %p453_p11 = por %p452_p12, %p451_p4 }
  0x29   : > { %p454_p6 = pnand %p453_p11, %p447_p2 }
  0x2b   : > { %457 = shalt.err (!%p454_p6)
}
  0x2c   : > { %386 = dma.hbm_to_vmem [thread:$0]  (!%p622_p13), %s618_s9, 64, %s626_s11, %s165_s13  }
  0x2d   : > { %p727_p9 = scmp.lt.s32.totalorder %s522_s20, 3  ;;  %p728_p7 = scmp.ge.s32.totalorder %s522_s20, 1 }
  0x2f   : > { %p181_p0 = pnand %p728_p7, %p727_p9 }
  0x30   : > { %s653_s7 = sand.u32 (!%p181_p0), 1, %s514_s18   ;;  %p729_p6 = scmp.ne.s32.totalorder (!%p181_p0), %s723_s27, 0 }
  0x31   : > { %184 = sbr.rel (%p181_p0) target bundleno = 432 (0x1b0), region = 36  ;;  %s368_s8 = sshll.u32 (!%p181_p0), %s653_s7, 2 }
  0x32   : > { %s187_s10 = scalar_lea.sflag (!%p181_p0), [#allocation4], %s653_s7  ;;  %s190_s12 = scalar_lea.vmem (!%p181_p0), [#allocation3], %s368_s8 }
  0x36   : > { %501 = dma.done.wait (%p729_p6), %s187_s10, 64  }
  0x37   : > { %503 = vsyncadd (%p729_p6), %s187_s10, 4294967232  ;;  %vm216_vm0 = vcmask 125952   ;;  %v215_v1 = vld [vmem:[%s190_s12] sm:$0xf]  ;;  %v525_v5 = vmov 0   ;;  %s372_s16 = sshll.u32 %s576_s3, 6 }
  0x38   : > { %v217_v2 = vsel %vm216_vm0, %v215_v1, 0.0  ;;  %v228_v3 = vmul.f32 %v215_v1, %v215_v1  ;;  %426 = vset.pattern.permute.xlu1 %v525_v5  ;;  %427 = vset.pattern.permute.xlu0 %v525_v5  ;;  %v370_v6 = vld [vmem:[#allocation2] ss:$0 sm:$0xff]  ;;  %s214_s21 = scalar_lea.vmem [#allocation6], %s368_s8  ;;  %s677_s30 = scalar_lea.hbm %s719_s4, %s372_s16 }
  0x39   : > { %218 = vadd.xlane.f32.xlu0 %v217_v2  ;;  %v247_v29 = vld [vmem:[%s716_s1] sm:$0xf]  ;;  %s292_s23 = sshll.u32 %s214_s21, 4  ;;  %s279_s5 = scalar_lea.sflag [#allocation5], %s653_s7  ;;  %s293_s23 = int_to_ptr.vmem [resolvable:$true] %s292_s23 }
  0x3a   : > { %v229_v4 = vsel %vm216_vm0, %v228_v3, 0.0  ;;  %v249_v32 = vld [vmem:[%s717_s2] sm:$0xf]  ;;  %s458_s6 = scalar_lea.vmem %s293_s23, 64  ;;  %p730_p12 = scmp.ne.s32.totalorder %s724_s28, 0 }
  0x3b   : > { %p459_p11 = scmp.ne.s32.totalorder %s293_s23, %s458_s6  ;;  %s526_s3 = smov [#allocation6]  }
  0x3c   : > { %s462_s8 = sshll.u32 %s526_s3, 4  ;;  %s463_s8 = int_to_ptr.vmem [resolvable:$false] %s462_s8 }
  0x3d   : > { %230 = vadd.xlane.f32.xlu0 %v229_v4  ;;  %p460_p13 = pnand %p459_p11, %p730_p12  ;;  %s464_s10 = scalar_lea.vmem %s463_s8, 128 }
  0x3e   : > { %p465_p3 = scmp.lt.s32.totalorder %s293_s23, %s463_s8  ;;  %p466_p5 = scmp.lt.s32.totalorder %s464_s10, %s458_s6 }
  0x3f   : > { %p461_p1 = pneg %p460_p13 }
  0x40   : > { %p467_p8 = por %p466_p5, %p465_p3 }
  0x42   : > { %p468_p10 = pnand %p467_p8, %p461_p1 }
  0x53   : > { %272 = vperm.xlu0 %427, %v370_v6  }
  0xc2   : > { %v219_v7 = vpop.xlane.xlu0 %218 }
  0xc3   : > { %v220_v8 = vrot.slane %v219_v7, 4 }
  0xc5   : > { %v221_v9 = vadd.f32 %v220_v8, %v219_v7 }
  0xc6   : > { %v231_v10 = vpop.xlane.xlu0 %230 }
  0xc7   : > { %v222_v11 = vrot.slane %v221_v9, 2  ;;  %v232_v12 = vrot.slane %v231_v10, 4 }
  0xc9   : > { %v233_v13 = vadd.f32 %v232_v12, %v231_v10  ;;  %v223_v14 = vadd.f32 %v222_v11, %v221_v9 }
  0xcb   : > { %v234_v15 = vrot.slane %v233_v13, 2  ;;  %v224_v16 = vrot.slane %v223_v14, 1 }
  0xcd   : > { %v225_v17 = vadd.f32 %v224_v16, %v223_v14  ;;  %v235_v18 = vadd.f32 %v234_v15, %v233_v13 }
  0xce   : > { %v273_v38 = vpop.permute.xlu0 %272 }
  0xcf   : > { %375 = vpush %v225_v17  ;;  %v236_v19 = vrot.slane %v235_v18, 1 }
  0xd1   : > { %v237_v20 = vadd.f32 %v236_v19, %v235_v18 }
  0xd3   : > { %377 = vpush %v237_v20 }
 0x100   : > { %s376_s27 = spop %375 }
 0x101   : > { %v227_v21 = vstv %s376_s27 }
 0x102   : > { %v240_v22 = vmul.f32 0.015625, %v227_v21 }
 0x104   : > { %s378_s9 = spop %377  ;;  %v242_v24 = vmul.f32 %v240_v22, %v240_v22 }
 0x105   : > { %v239_v23 = vstv %s378_s9 }
 0x106   : > { %v241_v25 = vmul.f32 0.015625, %v239_v23 }
 0x108   : > { %v243_v26 = vsub.f32 %v241_v25, %v242_v24 }
 0x10a   : > { %v244_v27 = vmax.f32 %v243_v26, 0.0 }
 0x10c   : > { %v245_v28 = vadd.f32 1e-08, %v244_v27 }
 0x10e   : > { %428 = vrsqrt.f32 %v245_v28 }
 0x11b   : > { %v429_v30 = vpop.eup %428 }
 0x11c   : > { %v248_v31 = vmul.f32 %v429_v30, %v247_v29 }
 0x11e   : > { %254 = vperm.xlu1 %426, %v248_v31   ;;  %v250_v33 = vmul.f32 %v248_v31, %v240_v22 }
 0x120   : > { %v251_v34 = vsub.f32 %v249_v32, %v250_v33 }
 0x122   : > { %260 = vperm.xlu1 %426, %v251_v34  }
 0x199   : > { %v255_v35 = vpop.permute.xlu1 %254 }
 0x19a   : > { %v257_v36 = vmul.f32 %v255_v35, %v215_v1 }
 0x19d   : > { %v261_v37 = vpop.permute.xlu1 %260 }
 0x19e   : > { %v263_v39 = vadd.f32 %v261_v37, %v257_v36 }
 0x1a0   : > { %vm264_vm1 = vcmp.ge.f32.partialorder %v263_v39, 0.0  ;;  %v275_v40 = vmul.f32 %v273_v38, %v263_v39 }
 0x1a2   : > { %v276_v41 = vsel %vm264_vm1, %v263_v39, %v275_v40 }
 0x1a3   : > { %277 = vst.msk [vmem:[%s214_s21] sm:$0xf] %vm216_vm0, %v276_v41 }
 0x1a4   : > { %471 = shalt.err (!%p468_p10)
}
 0x1a5   : > { %s472_s12 = scalar_lea.hbm %s677_s30, 64  ;;  %s476_s9 = scalar_lea.hbm %s719_s4, 128 }
 0x1a6   : > { %p473_p2 = scmp.ne.s32.totalorder %s677_s30, %s472_s12  ;;  %p477_p7 = scmp.lt.s32.totalorder %s677_s30, %s719_s4 }
 0x1a7   : > { %p478_p0 = scmp.lt.s32.totalorder %s476_s9, %s472_s12 }
 0x1a8   : > { %p474_p4 = pnand %p473_p2, %p730_p12 }
 0x1a9   : > { %p479_p6 = por %p478_p0, %p477_p7 }
 0x1aa   : > { %p475_p9 = pneg %p474_p4 }
 0x1ac   : > { %p480_p11 = pnand %p479_p6, %p475_p9 }
 0x1ae   : > { %483 = shalt.err (!%p480_p11)
}
 0x1af   : > { %381 = dma.vmem_to_hbm [thread:$0]  (%p730_p12), %s293_s23, 64, %s677_s30, %s279_s5  }
 0x1b0 PF: > { %s304_s14 = sand.u32 1, %s510_s17   ;;  %p731_p13 = scmp.ne.s32.totalorder %s725_s29, 0 }
 0x1b1   : > { %p732_p1 = scmp.ge.s32.totalorder %s522_s20, 2  ;;  %s305_s15 = scalar_lea.sflag [#allocation5], %s304_s14 }
 0x1b3   : > { %p388_p3 = pnand %p732_p1, %p731_p13 }
 0x1b5   : > { %p389_p5 = pneg %p388_p3 }
 0x1b7   : > { %505 = dma.done.wait (%p389_p5), %s305_s15, 64  }
 0x1b8   : > { %507 = vsyncadd (%p389_p5), %s305_s15, 4294967232  ;;  %p19_p8 = scmp.ge.s32.totalorder %s580_s22, 4   ;;  %s733_s17 = smov %s514_s18 }
 0x1b9   : > { %s734_s18 = smov %s518_s19  ;;  %s735_s19 = smov %s592_s25 }
 0x1ba   : > { %s736_s20 = smov %s580_s22  ;;  %21 = sbr.rel (!%p19_p8) target bundleno = 8 (0x8), region = 81 }
 0x1bf   :  { %310 = vsyncpa [#allocation4], 1 }
 0x1c0   :  { %312 = vsyncpa [#allocation4 + $0x1], 1 }
 0x1c1   :  { %313 = vsyncpa [#allocation5], 1 }
 0x1c2   :  { %315 = vsyncpa [#allocation5 + $0x1], 1 }

</bundles_post_ra>
